<compile_context>
chip_gen: v5e
topology: v5e:2x2
jax: 0.10.0
libtpu: 0.0.40
codegen_flags: <defaults>
</compile_context>

<pallas_src>
import jax
import jax.numpy as jnp
from jax.experimental import pallas as pl
from jax.experimental.pallas import tpu as pltpu

_LANE = 128


def _round_up(n, m):
    return ((n + m - 1) // m) * m


def _multi_attention_kernel(x_ref, w1_ref, b1_ref, w2_ref, b2_ref, o_ref):
    # x_ref : (tb, S, Dp)   compute dtype (bf16 or f32)
    # w1_ref: (Dp, H*Fp)    compute dtype  -- all heads fused along N (head-major columns)
    # b1_ref: (1, H*Fp)     f32
    # w2_ref: (H, Fp, Dp)   compute dtype
    # b2_ref: (H, 1, Dp)    f32
    # o_ref : (tb, H*Dp)    output dtype (f32)
    tb, S, Dp = x_ref.shape
    H, Fp, _ = w2_ref.shape

    x3 = x_ref[...]                                   # (tb, S, Dp)
    x2 = x3.reshape(tb * S, Dp)                       # lane-layout preserving merge
    x3f = x3.astype(jnp.float32)                      # f32 copy for the weighted sum

    # --- matmul 1 fused across heads: (tb*S, Dp) @ (Dp, H*Fp), f32 accumulation -----
    h = jnp.dot(x2, w1_ref[...], preferred_element_type=jnp.float32)
    h = jnp.tanh(h + b1_ref[...]).astype(x2.dtype)    # (tb*S, H*Fp) compute dtype

    # --- per head: scores -> softmax over seq -> weighted sum of x ------------------
    # H is a small static int, so a Python loop (unrolled at trace time) is fine here.
    for hh in range(H):
        s = jnp.dot(h[:, hh * Fp:(hh + 1) * Fp], w2_ref[hh],
                    preferred_element_type=jnp.float32)
        s = (s + b2_ref[hh]).reshape(tb, S, Dp)       # (tb, S, Dp) f32

        m = jnp.max(s, axis=1, keepdims=True)         # (tb, 1, Dp)
        e = jnp.exp(s - m)                            # (tb, S, Dp)
        num = jnp.sum(e * x3f, axis=1)                # (tb, Dp)
        den = jnp.sum(e, axis=1)                      # (tb, Dp)
        out_h = num * pl.reciprocal(den, approx=True) # EUP reciprocal, no (tb,S,Dp) divide

        o_ref[:, hh * Dp:(hh + 1) * Dp] = out_h.astype(o_ref.dtype)


def multi_attention_pallas(x, w1, b1, w2, b2, *,
                           compute_dtype=jnp.bfloat16, batch_tile=None):
    """x: (B, S, D). w1: (H, D, F), b1: (H, F), w2: (H, F, D), b2: (H, D).

    Returns (B, H*D) == torch.cat([head_h(x) for h in heads], dim=1).
    """
    B, S, D = x.shape
    H, D_w, F = w1.shape
    assert D_w == D and w2.shape == (H, F, D) and b1.shape == (H, F) and b2.shape == (H, D)

    orig_dtype = x.dtype
    Dp = _round_up(D, _LANE)
    Fp = _round_up(F, _LANE)

    cbytes = jnp.dtype(compute_dtype).itemsize
    obytes = jnp.dtype(orig_dtype).itemsize

    # --- generation-aware VMEM budget (v7x: 64 MiB/TC, v5e/v6e: 128 MiB) -------------
    try:
        vmem_cap = int(pltpu.get_tpu_info().vmem_capacity_bytes)
    except Exception:
        vmem_cap = 64 * 2 ** 20          # conservative fallback (safe on every gen)
    vmem_budget = int(vmem_cap * 0.75)   # leave headroom for compiler scratch/semaphores

    # weights/biases are fetched once per grid step (double-buffered, but tiny)
    w_bytes = (2 * 2 * H * Fp * Dp * cbytes          # W1(all heads) + W2 blocks
               + 2 * H * (Fp + Dp) * 4)              # biases (f32)

    def _vmem_for(tb_):
        x_blk = 2 * tb_ * S * Dp * cbytes            # double-buffered x blocks
        out_blk = 2 * tb_ * H * Dp * obytes          # double-buffered out blocks
        temps = tb_ * S * (H * Fp * (4 + cbytes)     # hidden f32 + compute-dtype copy
                           + Dp * 4                  # x tile promoted to f32
                           + Dp * 8)                 # per-head scores + exp (f32)
        return x_blk + out_blk + w_bytes + temps

    # --- batch tile: biggest multiple of 8 (<=512) whose working set fits the budget -
    if batch_tile is None:
        batch_tile = 8
        for t in range(min(512, _round_up(B, 8)), 7, -8):
            if _vmem_for(t) <= vmem_budget:
                batch_tile = t
                break
    if B <= batch_tile:
        tb, Bp = B, B                       # single tile: block dim == full array dim
    else:
        tb = max(8, (batch_tile // 8) * 8)  # sublane-friendly output blocks
        Bp = _round_up(B, tb)
    num_b_tiles = Bp // tb

    # --- zero-pad (exact: padded features/batches contribute 0, sliced off) ----------
    x_p = jnp.pad(x, ((0, Bp - B), (0, 0), (0, Dp - D))).astype(compute_dtype)
    w1_p = jnp.pad(w1, ((0, 0), (0, Dp - D), (0, Fp - F))).astype(compute_dtype)
    w1_all = jnp.transpose(w1_p, (1, 0, 2)).reshape(Dp, H * Fp)      # head-major columns
    b1_all = jnp.pad(b1, ((0, 0), (0, Fp - F))).astype(jnp.float32).reshape(1, H * Fp)
    w2_p = jnp.pad(w2, ((0, 0), (0, Fp - F), (0, Dp - D))).astype(compute_dtype)
    b2_p = jnp.pad(b2, ((0, 0), (0, Dp - D))).astype(jnp.float32).reshape(H, 1, Dp)

    # --- advisory cost estimate (x read once, weights re-read per batch tile) --------
    flops = 4 * H * Bp * S * Dp * Fp
    transcendentals = Bp * S * H * (Fp + Dp)
    bytes_accessed = int(
        x_p.size * cbytes
        + num_b_tiles * (w1_all.size + w2_p.size) * cbytes
        + num_b_tiles * (b1_all.size + b2_p.size) * 4
        + Bp * H * Dp * obytes)

    vmem_limit = int(min(int(vmem_cap * 0.9),
                         max(32 * 2 ** 20, 2 * _vmem_for(tb))))

    out_p = pl.pallas_call(
        _multi_attention_kernel,
        out_shape=jax.ShapeDtypeStruct((Bp, H * Dp), orig_dtype),
        grid_spec=pltpu.PrefetchScalarGridSpec(
            num_scalar_prefetch=0,
            grid=(num_b_tiles,),                               # x streamed once; heads fused
            in_specs=[
                pl.BlockSpec((tb, S, Dp), lambda b: (b, 0, 0)),    # x tile
                pl.BlockSpec((Dp, H * Fp), lambda b: (0, 0)),      # W1 (all heads)
                pl.BlockSpec((1, H * Fp), lambda b: (0, 0)),       # b1 (all heads)
                pl.BlockSpec((H, Fp, Dp), lambda b: (0, 0, 0)),    # W2 (per head)
                pl.BlockSpec((H, 1, Dp), lambda b: (0, 0, 0)),     # b2 (per head)
            ],
            out_specs=pl.BlockSpec((tb, H * Dp), lambda b: (b, 0)),  # lane-dense slab
        ),
        compiler_params=pltpu.CompilerParams(
            dimension_semantics=("parallel",),
            vmem_limit_bytes=vmem_limit),
        cost_estimate=pl.CostEstimate(
            flops=flops, transcendentals=transcendentals,
            bytes_accessed=bytes_accessed),
    )(x_p, w1_all, b1_all, w2_p, b2_p)

    # strip feature / batch padding and lay heads out as torch.cat(..., dim=1)
    return out_p.reshape(Bp, H, Dp)[:B, :, :D].reshape(B, H * D)


def multi_attention_reference(x, w1, b1, w2, b2, compute_dtype=jnp.float32):
    """Plain-JAX reference mirroring the PyTorch forward (and the kernel compute path)."""
    H = w1.shape[0]
    prec = (jax.lax.Precision.HIGHEST if compute_dtype == jnp.float32
            else jax.lax.Precision.DEFAULT)
    xc = x.astype(compute_dtype)
    outs = []
    for h in range(H):
        a = jnp.dot(xc, w1[h].astype(compute_dtype),
                    precision=prec, preferred_element_type=jnp.float32)
        a = jnp.tanh(a + b1[h]).astype(compute_dtype)
        s = jnp.dot(a, w2[h].astype(compute_dtype),
                    precision=prec, preferred_element_type=jnp.float32)
        s = s + b2[h]
        alpha = jax.nn.softmax(s, axis=1)                        # softmax over seq (dim=1)
        outs.append(jnp.sum(alpha * xc.astype(jnp.float32), axis=1))
    return jnp.concatenate(outs, axis=1)                         # (B, H*D)


if __name__ == "__main__":
    # Small shapes consistent with the module: (batch, seq, in_size), hidden, n_heads.
    batch, seq, in_size, hidden_size, n_heads = 2, 8, 32, 64, 4

    key = jax.random.PRNGKey(0)
    kx, kw1, kb1, kw2, kb2 = jax.random.split(key, 5)

    x = jax.random.normal(kx, (batch, seq, in_size), jnp.float32)

    # nn.Linear-style deterministic init (the orthogonal init in the module only
    # affects values, not the forward math). Stored as (in, out) = W.T of PyTorch.
    lim1 = 1.0 / (in_size ** 0.5)
    lim2 = 1.0 / (hidden_size ** 0.5)
    w1 = jax.random.uniform(kw1, (n_heads, in_size, hidden_size), jnp.float32, -lim1, lim1)
    b1 = jax.random.uniform(kb1, (n_heads, hidden_size), jnp.float32, -lim1, lim1)
    w2 = jax.random.uniform(kw2, (n_heads, hidden_size, in_size), jnp.float32, -lim2, lim2)
    b2 = jax.random.uniform(kb2, (n_heads, in_size), jnp.float32, -lim2, lim2)

    # References: full-precision f32 and one mirroring the kernel's bf16 compute path.
    ref_hi = multi_attention_reference(x, w1, b1, w2, b2, compute_dtype=jnp.float32)
    ref_bf16 = multi_attention_reference(x, w1, b1, w2, b2, compute_dtype=jnp.bfloat16)

    # Default path: bf16 operands/storage, f32 accumulation.
    out = multi_attention_pallas(x, w1, b1, w2, b2)
    out = jax.block_until_ready(out)
    assert out.shape == (batch, n_heads * in_size)
    assert jnp.allclose(out, ref_bf16, atol=1e-2, rtol=1e-2), "bf16-path mismatch vs bf16 reference"
    assert jnp.allclose(out, ref_hi, atol=1e-1, rtol=1e-1), "bf16-path drifted too far from f32 reference"

    # f32 compute path (no operand cast) as a secondary check.
    out_f32 = multi_attention_pallas(x, w1, b1, w2, b2, compute_dtype=jnp.float32)
    out_f32 = jax.block_until_ready(out_f32)
    assert jnp.allclose(out_f32, ref_hi, atol=3e-2, rtol=3e-2), "f32-path mismatch vs f32 reference"

    # TODO(synk): the PyTorch module also stashes self.alpha (attention weights) as a
    # side attribute; the kernel computes the softmax internally but does not return it.
    print("KERNEL_OK")
</pallas_src>

<mosaic_0001>
module attributes {stable_mosaic.version = 11 : i64} {
  func.func @_multi_attention_kernel(%arg0: i32, %arg1: memref<2x8x128xbf16, #tpu.memory_space<vmem>>, %arg2: memref<128x512xbf16, #tpu.memory_space<vmem>>, %arg3: memref<1x512xf32, #tpu.memory_space<vmem>>, %arg4: memref<4x128x128xbf16, #tpu.memory_space<vmem>>, %arg5: memref<4x1x128xf32, #tpu.memory_space<vmem>>, %arg6: memref<2x512xf32, #tpu.memory_space<vmem>>) attributes {dimension_semantics = [#tpu.dimension_semantics<parallel>], iteration_bounds = array<i64: 1>, scalar_prefetch = 0 : i64, scratch_operands = 0 : i64, tpu.core_type = #tpu.core_type<tc>, window_params = [{transform_indices = @transform_0, window_bounds = array<i64: 2, 8, 128>}, {pipeline_mode = #tpu.pipeline_mode<synchronous>, transform_indices = @transform_1, window_bounds = array<i64: 128, 512>}, {pipeline_mode = #tpu.pipeline_mode<synchronous>, transform_indices = @transform_2, window_bounds = array<i64: 1, 512>}, {pipeline_mode = #tpu.pipeline_mode<synchronous>, transform_indices = @transform_3, window_bounds = array<i64: 4, 128, 128>}, {pipeline_mode = #tpu.pipeline_mode<synchronous>, transform_indices = @transform_4, window_bounds = array<i64: 4, 1, 128>}, {transform_indices = @transform_5, window_bounds = array<i64: 2, 512>}]} {
    %c0 = arith.constant 0 : index
    %c0_0 = arith.constant 0 : index
    %c0_1 = arith.constant 0 : index
    %0 = vector.load %arg1[%c0, %c0_0, %c0_1] : memref<2x8x128xbf16, #tpu.memory_space<vmem>>, vector<2x8x128xbf16>
    %1 = vector.shape_cast %0 : vector<2x8x128xbf16> to vector<16x128xbf16>
    %2 = arith.extf %0 : vector<2x8x128xbf16> to vector<2x8x128xf32>
    %c0_2 = arith.constant 0 : index
    %c0_3 = arith.constant 0 : index
    %3 = vector.load %arg2[%c0_2, %c0_3] : memref<128x512xbf16, #tpu.memory_space<vmem>>, vector<128x512xbf16>
    %cst = arith.constant dense<0.000000e+00> : vector<16x512xf32>
    %4 = tpu.matmul %1, %3, %cst {dimension_numbers = #tpu.dot_dimension_numbers<[1], [0], [0], [1], [0, 0, 1, 1], [], []>} : vector<16x128xbf16>, vector<128x512xbf16>, vector<16x512xf32> -> vector<16x512xf32>
    %c0_4 = arith.constant 0 : index
    %c0_5 = arith.constant 0 : index
    %5 = vector.load %arg3[%c0_4, %c0_5] : memref<1x512xf32, #tpu.memory_space<vmem>>, vector<1x512xf32>
    %6 = vector.broadcast %5 : vector<1x512xf32> to vector<16x512xf32>
    %7 = arith.addf %4, %6 : vector<16x512xf32>
    %8 = math.tanh %7 : vector<16x512xf32>
    %9 = arith.truncf %8 : vector<16x512xf32> to vector<16x512xbf16>
    %10 = vector.extract_strided_slice %9 {offsets = [0, 0], sizes = [16, 128], strides = [1, 1]} : vector<16x512xbf16> to vector<16x128xbf16>
    %c0_6 = arith.constant 0 : index
    %c0_7 = arith.constant 0 : index
    %c0_8 = arith.constant 0 : index
    %11 = vector.load %arg4[%c0_6, %c0_7, %c0_8] : memref<4x128x128xbf16, #tpu.memory_space<vmem>>, vector<1x128x128xbf16>
    %12 = vector.shape_cast %11 : vector<1x128x128xbf16> to vector<128x128xbf16>
    %cst_9 = arith.constant dense<0.000000e+00> : vector<16x128xf32>
    %13 = tpu.matmul %10, %12, %cst_9 {dimension_numbers = #tpu.dot_dimension_numbers<[1], [0], [0], [1], [0, 0, 1, 1], [], []>} : vector<16x128xbf16>, vector<128x128xbf16>, vector<16x128xf32> -> vector<16x128xf32>
    %c0_10 = arith.constant 0 : index
    %c0_11 = arith.constant 0 : index
    %c0_12 = arith.constant 0 : index
    %14 = vector.load %arg5[%c0_10, %c0_11, %c0_12] : memref<4x1x128xf32, #tpu.memory_space<vmem>>, vector<1x1x128xf32>
    %15 = vector.shape_cast %14 : vector<1x1x128xf32> to vector<1x128xf32>
    %16 = vector.broadcast %15 : vector<1x128xf32> to vector<16x128xf32>
    %17 = arith.addf %13, %16 : vector<16x128xf32>
    %18 = vector.shape_cast %17 : vector<16x128xf32> to vector<2x8x128xf32>
    %cst_13 = arith.constant dense<0xFF800000> : vector<2x128xf32>
    %19 = vector.multi_reduction <maximumf>, %18, %cst_13 [1] : vector<2x8x128xf32> to vector<2x128xf32>
    %20 = vector.shape_cast %19 : vector<2x128xf32> to vector<2x1x128xf32>
    %21 = vector.broadcast %20 : vector<2x1x128xf32> to vector<2x8x128xf32>
    %22 = arith.subf %18, %21 : vector<2x8x128xf32>
    %23 = math.exp %22 : vector<2x8x128xf32>
    %24 = arith.mulf %23, %2 : vector<2x8x128xf32>
    %cst_14 = arith.constant dense<0.000000e+00> : vector<2x128xf32>
    %25 = vector.multi_reduction <add>, %24, %cst_14 [1] : vector<2x8x128xf32> to vector<2x128xf32>
    %cst_15 = arith.constant dense<0.000000e+00> : vector<2x128xf32>
    %26 = vector.multi_reduction <add>, %23, %cst_15 [1] : vector<2x8x128xf32> to vector<2x128xf32>
    %27 = tpu.reciprocal %26 {approx = true} : vector<2x128xf32> -> vector<2x128xf32>
    %28 = arith.mulf %25, %27 : vector<2x128xf32>
    %c0_16 = arith.constant 0 : index
    %c0_17 = arith.constant 0 : index
    %29 = vector.load %arg6[%c0_16, %c0_17] : memref<2x512xf32, #tpu.memory_space<vmem>>, vector<2x128xf32>
    tpu.vector_store %arg6[%c0_16, %c0_17], %28 {strides = array<i32>} : memref<2x512xf32, #tpu.memory_space<vmem>>, vector<2x128xf32>,
    %30 = vector.extract_strided_slice %9 {offsets = [0, 128], sizes = [16, 128], strides = [1, 1]} : vector<16x512xbf16> to vector<16x128xbf16>
    %c1 = arith.constant 1 : index
    %c0_18 = arith.constant 0 : index
    %c0_19 = arith.constant 0 : index
    %31 = vector.load %arg4[%c1, %c0_18, %c0_19] : memref<4x128x128xbf16, #tpu.memory_space<vmem>>, vector<1x128x128xbf16>
    %32 = vector.shape_cast %31 : vector<1x128x128xbf16> to vector<128x128xbf16>
    %cst_20 = arith.constant dense<0.000000e+00> : vector<16x128xf32>
    %33 = tpu.matmul %30, %32, %cst_20 {dimension_numbers = #tpu.dot_dimension_numbers<[1], [0], [0], [1], [0, 0, 1, 1], [], []>} : vector<16x128xbf16>, vector<128x128xbf16>, vector<16x128xf32> -> vector<16x128xf32>
    %c1_21 = arith.constant 1 : index
    %c0_22 = arith.constant 0 : index
    %c0_23 = arith.constant 0 : index
    %34 = vector.load %arg5[%c1_21, %c0_22, %c0_23] : memref<4x1x128xf32, #tpu.memory_space<vmem>>, vector<1x1x128xf32>
    %35 = vector.shape_cast %34 : vector<1x1x128xf32> to vector<1x128xf32>
    %36 = vector.broadcast %35 : vector<1x128xf32> to vector<16x128xf32>
    %37 = arith.addf %33, %36 : vector<16x128xf32>
    %38 = vector.shape_cast %37 : vector<16x128xf32> to vector<2x8x128xf32>
    %cst_24 = arith.constant dense<0xFF800000> : vector<2x128xf32>
    %39 = vector.multi_reduction <maximumf>, %38, %cst_24 [1] : vector<2x8x128xf32> to vector<2x128xf32>
    %40 = vector.shape_cast %39 : vector<2x128xf32> to vector<2x1x128xf32>
    %41 = vector.broadcast %40 : vector<2x1x128xf32> to vector<2x8x128xf32>
    %42 = arith.subf %38, %41 : vector<2x8x128xf32>
    %43 = math.exp %42 : vector<2x8x128xf32>
    %44 = arith.mulf %43, %2 : vector<2x8x128xf32>
    %cst_25 = arith.constant dense<0.000000e+00> : vector<2x128xf32>
    %45 = vector.multi_reduction <add>, %44, %cst_25 [1] : vector<2x8x128xf32> to vector<2x128xf32>
    %cst_26 = arith.constant dense<0.000000e+00> : vector<2x128xf32>
    %46 = vector.multi_reduction <add>, %43, %cst_26 [1] : vector<2x8x128xf32> to vector<2x128xf32>
    %47 = tpu.reciprocal %46 {approx = true} : vector<2x128xf32> -> vector<2x128xf32>
    %48 = arith.mulf %45, %47 : vector<2x128xf32>
    %c0_27 = arith.constant 0 : index
    %c128 = arith.constant 128 : index
    %49 = vector.load %arg6[%c0_27, %c128] : memref<2x512xf32, #tpu.memory_space<vmem>>, vector<2x128xf32>
    tpu.vector_store %arg6[%c0_27, %c128], %48 {strides = array<i32>} : memref<2x512xf32, #tpu.memory_space<vmem>>, vector<2x128xf32>,
    %50 = vector.extract_strided_slice %9 {offsets = [0, 256], sizes = [16, 128], strides = [1, 1]} : vector<16x512xbf16> to vector<16x128xbf16>
    %c2 = arith.constant 2 : index
    %c0_28 = arith.constant 0 : index
    %c0_29 = arith.constant 0 : index
    %51 = vector.load %arg4[%c2, %c0_28, %c0_29] : memref<4x128x128xbf16, #tpu.memory_space<vmem>>, vector<1x128x128xbf16>
    %52 = vector.shape_cast %51 : vector<1x128x128xbf16> to vector<128x128xbf16>
    %cst_30 = arith.constant dense<0.000000e+00> : vector<16x128xf32>
    %53 = tpu.matmul %50, %52, %cst_30 {dimension_numbers = #tpu.dot_dimension_numbers<[1], [0], [0], [1], [0, 0, 1, 1], [], []>} : vector<16x128xbf16>, vector<128x128xbf16>, vector<16x128xf32> -> vector<16x128xf32>
    %c2_31 = arith.constant 2 : index
    %c0_32 = arith.constant 0 : index
    %c0_33 = arith.constant 0 : index
    %54 = vector.load %arg5[%c2_31, %c0_32, %c0_33] : memref<4x1x128xf32, #tpu.memory_space<vmem>>, vector<1x1x128xf32>
    %55 = vector.shape_cast %54 : vector<1x1x128xf32> to vector<1x128xf32>
    %56 = vector.broadcast %55 : vector<1x128xf32> to vector<16x128xf32>
    %57 = arith.addf %53, %56 : vector<16x128xf32>
    %58 = vector.shape_cast %57 : vector<16x128xf32> to vector<2x8x128xf32>
    %cst_34 = arith.constant dense<0xFF800000> : vector<2x128xf32>
    %59 = vector.multi_reduction <maximumf>, %58, %cst_34 [1] : vector<2x8x128xf32> to vector<2x128xf32>
    %60 = vector.shape_cast %59 : vector<2x128xf32> to vector<2x1x128xf32>
    %61 = vector.broadcast %60 : vector<2x1x128xf32> to vector<2x8x128xf32>
    %62 = arith.subf %58, %61 : vector<2x8x128xf32>
    %63 = math.exp %62 : vector<2x8x128xf32>
    %64 = arith.mulf %63, %2 : vector<2x8x128xf32>
    %cst_35 = arith.constant dense<0.000000e+00> : vector<2x128xf32>
    %65 = vector.multi_reduction <add>, %64, %cst_35 [1] : vector<2x8x128xf32> to vector<2x128xf32>
    %cst_36 = arith.constant dense<0.000000e+00> : vector<2x128xf32>
    %66 = vector.multi_reduction <add>, %63, %cst_36 [1] : vector<2x8x128xf32> to vector<2x128xf32>
    %67 = tpu.reciprocal %66 {approx = true} : vector<2x128xf32> -> vector<2x128xf32>
    %68 = arith.mulf %65, %67 : vector<2x128xf32>
    %c0_37 = arith.constant 0 : index
    %c256 = arith.constant 256 : index
    %69 = vector.load %arg6[%c0_37, %c256] : memref<2x512xf32, #tpu.memory_space<vmem>>, vector<2x128xf32>
    tpu.vector_store %arg6[%c0_37, %c256], %68 {strides = array<i32>} : memref<2x512xf32, #tpu.memory_space<vmem>>, vector<2x128xf32>,
    %70 = vector.extract_strided_slice %9 {offsets = [0, 384], sizes = [16, 128], strides = [1, 1]} : vector<16x512xbf16> to vector<16x128xbf16>
    %c3 = arith.constant 3 : index
    %c0_38 = arith.constant 0 : index
    %c0_39 = arith.constant 0 : index
    %71 = vector.load %arg4[%c3, %c0_38, %c0_39] : memref<4x128x128xbf16, #tpu.memory_space<vmem>>, vector<1x128x128xbf16>
    %72 = vector.shape_cast %71 : vector<1x128x128xbf16> to vector<128x128xbf16>
    %cst_40 = arith.constant dense<0.000000e+00> : vector<16x128xf32>
    %73 = tpu.matmul %70, %72, %cst_40 {dimension_numbers = #tpu.dot_dimension_numbers<[1], [0], [0], [1], [0, 0, 1, 1], [], []>} : vector<16x128xbf16>, vector<128x128xbf16>, vector<16x128xf32> -> vector<16x128xf32>
    %c3_41 = arith.constant 3 : index
    %c0_42 = arith.constant 0 : index
    %c0_43 = arith.constant 0 : index
    %74 = vector.load %arg5[%c3_41, %c0_42, %c0_43] : memref<4x1x128xf32, #tpu.memory_space<vmem>>, vector<1x1x128xf32>
    %75 = vector.shape_cast %74 : vector<1x1x128xf32> to vector<1x128xf32>
    %76 = vector.broadcast %75 : vector<1x128xf32> to vector<16x128xf32>
    %77 = arith.addf %73, %76 : vector<16x128xf32>
    %78 = vector.shape_cast %77 : vector<16x128xf32> to vector<2x8x128xf32>
    %cst_44 = arith.constant dense<0xFF800000> : vector<2x128xf32>
    %79 = vector.multi_reduction <maximumf>, %78, %cst_44 [1] : vector<2x8x128xf32> to vector<2x128xf32>
    %80 = vector.shape_cast %79 : vector<2x128xf32> to vector<2x1x128xf32>
    %81 = vector.broadcast %80 : vector<2x1x128xf32> to vector<2x8x128xf32>
    %82 = arith.subf %78, %81 : vector<2x8x128xf32>
    %83 = math.exp %82 : vector<2x8x128xf32>
    %84 = arith.mulf %83, %2 : vector<2x8x128xf32>
    %cst_45 = arith.constant dense<0.000000e+00> : vector<2x128xf32>
    %85 = vector.multi_reduction <add>, %84, %cst_45 [1] : vector<2x8x128xf32> to vector<2x128xf32>
    %cst_46 = arith.constant dense<0.000000e+00> : vector<2x128xf32>
    %86 = vector.multi_reduction <add>, %83, %cst_46 [1] : vector<2x8x128xf32> to vector<2x128xf32>
    %87 = tpu.reciprocal %86 {approx = true} : vector<2x128xf32> -> vector<2x128xf32>
    %88 = arith.mulf %85, %87 : vector<2x128xf32>
    %c0_47 = arith.constant 0 : index
    %c384 = arith.constant 384 : index
    %89 = vector.load %arg6[%c0_47, %c384] : memref<2x512xf32, #tpu.memory_space<vmem>>, vector<2x128xf32>
    tpu.vector_store %arg6[%c0_47, %c384], %88 {strides = array<i32>} : memref<2x512xf32, #tpu.memory_space<vmem>>, vector<2x128xf32>,
    return
  }
  func.func @transform_0(%arg0: i32) -> (i32, i32, i32) {
    %c0_i32 = arith.constant 0 : i32
    %c0_i32_0 = arith.constant 0 : i32
    %c0_i32_1 = arith.constant 0 : i32
    return %arg0, %c0_i32, %c0_i32_0 : i32, i32, i32
  }
  func.func @transform_1(%arg0: i32) -> (i32, i32) {
    %c0_i32 = arith.constant 0 : i32
    %c0_i32_0 = arith.constant 0 : i32
    %c0_i32_1 = arith.constant 0 : i32
    return %c0_i32, %c0_i32_0 : i32, i32
  }
  func.func @transform_2(%arg0: i32) -> (i32, i32) {
    %c0_i32 = arith.constant 0 : i32
    %c0_i32_0 = arith.constant 0 : i32
    %c0_i32_1 = arith.constant 0 : i32
    return %c0_i32, %c0_i32_0 : i32, i32
  }
  func.func @transform_3(%arg0: i32) -> (i32, i32, i32) {
    %c0_i32 = arith.constant 0 : i32
    %c0_i32_0 = arith.constant 0 : i32
    %c0_i32_1 = arith.constant 0 : i32
    %c0_i32_2 = arith.constant 0 : i32
    return %c0_i32, %c0_i32_0, %c0_i32_1 : i32, i32, i32
  }
  func.func @transform_4(%arg0: i32) -> (i32, i32, i32) {
    %c0_i32 = arith.constant 0 : i32
    %c0_i32_0 = arith.constant 0 : i32
    %c0_i32_1 = arith.constant 0 : i32
    %c0_i32_2 = arith.constant 0 : i32
    return %c0_i32, %c0_i32_0, %c0_i32_1 : i32, i32, i32
  }
  func.func @transform_5(%arg0: i32) -> (i32, i32) {
    %c0_i32 = arith.constant 0 : i32
    %c0_i32_0 = arith.constant 0 : i32
    return %arg0, %c0_i32 : i32, i32
  }
}

</mosaic_0001>

<bundles_post_ra>
// kernel: tpu_custom_call.1
= control target key start
LH: loop header
LB: loop body
LE: loop exit
PB: predicated region body
PF: predicated region fallthrough
CT: control target
= control target key end

     0   :  { %10 = vsyncpa [#allocation3], 0  ;;  %s1632_s0 = inlined_call_operand.hbm [shape: bf16[2,8,128], index: 0, kind: input, shape index: {}]   ;;  %s1633_s1 = inlined_call_operand.hbm [shape: bf16[128,512], index: 1, kind: input, shape index: {}]   ;;  %s1634_s2 = inlined_call_operand.hbm [shape: f32[1,512], index: 2, kind: input, shape index: {}]   ;;  %s1635_s3 = inlined_call_operand.hbm [shape: bf16[4,128,128], index: 3, kind: input, shape index: {}]   ;;  %s1636_s4 = inlined_call_operand.hbm [shape: f32[4,1,128], index: 4, kind: input, shape index: {}]   ;;  %s1637_s5 = inlined_call_operand.hbm [shape: f32[2,512], index: 5, kind: output, shape index: {}]  }
   0x1   :  { %11 = vsyncpa [#allocation6], 0 }
   0x2   :  { %12 = vsyncpa [#allocation9], 0  ;;  %s31_s20 = sshll.u32 %s1633_s1, 4  ;;  %s32_s20 = int_to_ptr.hbm [resolvable:$true] %s31_s20 }
   0x3   :  { %13 = vsyncpa [#allocation4], 0  ;;  %s1532_s21 = smov [#allocation5]   ;;  %s1533_s23 = smov 256  }
   0x4   :  { %s33_s22 = sshll.u32 %s1532_s21, 4  ;;  %s1534_s24 = smov 16   ;;  %s34_s22 = int_to_ptr.vmem [resolvable:$true] %s33_s22 }
   0x5   :  { %39 = dma.hbm_to_vmem [thread:$0]  %s32_s20, 4096, %s34_s22, [#allocation6], %s1533_s23, %s1533_s23, %s1534_s24  }
   0x6   :  { %s55_s27 = sshll.u32 %s1635_s3, 4  ;;  %s1535_s28 = smov [#allocation8]   ;;  %s56_s27 = int_to_ptr.hbm [resolvable:$true] %s55_s27 }
   0x7   :  { %s57_s29 = sshll.u32 %s1535_s28, 4  ;;  %s18_s1 = sshll.u32 %s1632_s0, 4  ;;  %s58_s29 = int_to_ptr.vmem [resolvable:$true] %s57_s29  ;;  %s19_s1 = int_to_ptr.hbm [resolvable:$true] %s18_s1 }
   0x8   :  { %s1536_s7 = smov 64   ;;  %s1537_s8 = smov 4  }
   0x9   :  { %63 = dma.hbm_to_vmem [thread:$0]  %s56_s27, 4096, %s58_s29, [#allocation9], %s1536_s7, %s1536_s7, %s1537_s8  }
   0xa   :  { %s45_s11 = sshll.u32 %s1634_s2, 4  ;;  %s1538_s12 = smov [#allocation2]   ;;  %s46_s11 = int_to_ptr.hbm [resolvable:$true] %s45_s11 }
   0xb   :  { %s20_s13 = sshll.u32 %s1538_s12, 4  ;;  %s1539_s3 = smov [#allocation7]   ;;  %s21_s13 = int_to_ptr.vmem [resolvable:$true] %s20_s13 }
   0xc   :  { %26 = dma.hbm_to_vmem [thread:$0]  %s19_s1, 128, %s21_s13, [#allocation3], %s1536_s7, %s1536_s7, %s1537_s8  }
   0xd   :  { %s47_s14 = sshll.u32 %s1539_s3, 4  ;;  %s68_s0 = sshll.u32 %s1636_s4, 4  ;;  %s48_s14 = int_to_ptr.vmem [resolvable:$true] %s47_s14  ;;  %s69_s0 = int_to_ptr.hbm [resolvable:$true] %s68_s0 }
   0xe   :  { %50 = dma.hbm_to_vmem [thread:$0]  %s46_s11, 64, %s48_s14, [#allocation6]  }
   0xf   :  { %s1540_s17 = smov [#allocation10]   ;;  %s1541_s19 = smov 1  }
  0x10   :  { %s70_s18 = sshll.u32 %s1540_s17, 4  ;;  %s71_s18 = int_to_ptr.vmem [resolvable:$true] %s70_s18 }
  0x11   :  { %76 = dma.hbm_to_vmem [thread:$0]  %s69_s0, 64, %s71_s18, [#allocation9], %s1534_s24, %s1534_s24, %s1541_s19  }
  0x12   :  { %1524 = dma.done.wait [#allocation3], 128  }
  0x13   :  { %1525 = vsyncadd [#allocation3], 4294967168 }
  0x14   :  { %1526 = dma.done.wait [#allocation6], 4160  }
  0x15   :  { %1527 = vsyncadd [#allocation6], 4294963136 }
  0x16   :  { %1528 = dma.done.wait [#allocation9], 4160  }
  0x17   :  { %1529 = vsyncadd [#allocation9], 4294963136  ;;  %v1110_v0 = vld [vmem:[#allocation5 + $0xe0] sm:$0xf]  ;;  %v1283_v1 = vld [vmem:[#allocation5 + $0xec] sm:$0xf0] }
  0x18   :  { %v1281_v2 = vld [vmem:[#allocation5 + $0xe4] sm:$0xf]  ;;  %v1111_v3 = vor.u32 %v1283_v1, %v1110_v0  ;;  %v1112_v4 = vld [vmem:[#allocation5 + $0xf0] sm:$0xf0]  ;;  %v1118_v5 = vld [vmem:[#allocation5 + $0xe8] sm:$0xf] }
  0x19   :  { %v1284_v6 = vld [vmem:[#allocation5 + $0xf4] sm:$0xf0]  ;;  %v1115_v7 = vor.u32 %v1281_v2, %v1112_v4  ;;  %v1282_v9 = vld [vmem:[#allocation5 + $0xec] sm:$0xf]  ;;  %v1120_v10 = vld [vmem:[#allocation5 + $0xf8] sm:$0xf0] }
  0x1a   :  { %v1119_v8 = vor.u32 %v1284_v6, %v1118_v5  ;;  %v1094_v11 = vld [vmem:[#allocation5 + $0xc0] sm:$0xf]  ;;  %309 = vmatpush.bf16.msra.mxu0 %v1111_v3  ;;  %v1123_v12 = vor.u32 %v1282_v9, %v1120_v10  ;;  %v1279_v13 = vld [vmem:[#allocation5 + $0xcc] sm:$0xf0]  ;;  %v1277_v14 = vld [vmem:[#allocation5 + $0xc4] sm:$0xf] }
  0x1b   :  { %v1096_v15 = vld [vmem:[#allocation5 + $0xd0] sm:$0xf0]  ;;  %323 = vmatpush.bf16.msra.mxu1 %v1115_v7  ;;  %v1095_v16 = vor.u32 %v1279_v13, %v1094_v11  ;;  %v1102_v18 = vld [vmem:[#allocation5 + $0xc8] sm:$0xf]  ;;  %v1280_v19 = vld [vmem:[#allocation5 + $0xd4] sm:$0xf0] }
  0x1c   :  { %337 = vmatpush.bf16.msra.mxu2 %v1119_v8  ;;  %v1099_v17 = vor.u32 %v1277_v14, %v1096_v15  ;;  %v1278_v20 = vld [vmem:[#allocation5 + $0xcc] sm:$0xf]  ;;  %351 = vmatpush.bf16.msra.mxu3 %v1123_v12  ;;  %v1103_v21 = vor.u32 %v1280_v19, %v1102_v18  ;;  %v1104_v22 = vld [vmem:[#allocation5 + $0xd8] sm:$0xf0]  ;;  %v1078_v23 = vld [vmem:[#allocation5 + $0xa0] sm:$0xf] }
  0x1d   :  { %v1275_v24 = vld [vmem:[#allocation5 + $0xac] sm:$0xf0]  ;;  %v1107_v25 = vor.u32 %v1278_v20, %v1104_v22  ;;  %v1273_v26 = vld [vmem:[#allocation5 + $0xa4] sm:$0xf]  ;;  %v1080_v27 = vld [vmem:[#allocation5 + $0xb0] sm:$0xf0] }
  0x1e   :  { %v1086_v28 = vld [vmem:[#allocation5 + $0xa8] sm:$0xf]  ;;  %310 = vmatpush.bf16.msra.mxu0 %v1095_v16  ;;  %v1079_v29 = vor.u32 %v1275_v24, %v1078_v23  ;;  %v1276_v30 = vld [vmem:[#allocation5 + $0xb4] sm:$0xf0]  ;;  %v1274_v31 = vld [vmem:[#allocation5 + $0xac] sm:$0xf]  ;;  %v1083_v33 = vor.u32 %v1273_v26, %v1080_v27 }
  0x1f   :  { %v1088_v32 = vld [vmem:[#allocation5 + $0xb8] sm:$0xf0]  ;;  %324 = vmatpush.bf16.msra.mxu1 %v1099_v17  ;;  %v1087_v34 = vor.u32 %v1276_v30, %v1086_v28  ;;  %v1062_v35 = vld [vmem:[#allocation5 + $0x80] sm:$0xf]  ;;  %v1271_v36 = vld [vmem:[#allocation5 + $0x8c] sm:$0xf0] }
  0x20   :  { %338 = vmatpush.bf16.msra.mxu2 %v1103_v21  ;;  %v1269_v37 = vld [vmem:[#allocation5 + $0x84] sm:$0xf]  ;;  %352 = vmatpush.bf16.msra.mxu3 %v1107_v25  ;;  %v1091_v38 = vor.u32 %v1274_v31, %v1088_v32  ;;  %v1064_v39 = vld [vmem:[#allocation5 + $0x90] sm:$0xf0]  ;;  %v1070_v40 = vld [vmem:[#allocation5 + $0x88] sm:$0xf]  ;;  %v1063_v44 = vor.u32 %v1271_v36, %v1062_v35 }
  0x21   :  { %v1272_v41 = vld [vmem:[#allocation5 + $0x94] sm:$0xf0]  ;;  %v1270_v42 = vld [vmem:[#allocation5 + $0x8c] sm:$0xf]  ;;  %v1072_v43 = vld [vmem:[#allocation5 + $0x98] sm:$0xf0]  ;;  %v1067_v45 = vor.u32 %v1269_v37, %v1064_v39 }
  0x22   :  { %311 = vmatpush.bf16.msra.mxu0 %v1079_v29  ;;  %v1071_v46 = vor.u32 %v1272_v41, %v1070_v40  ;;  %v1046_v47 = vld [vmem:[#allocation5 + $0x60] sm:$0xf]  ;;  %v1267_v48 = vld [vmem:[#allocation5 + $0x6c] sm:$0xf0]  ;;  %v1265_v49 = vld [vmem:[#allocation5 + $0x64] sm:$0xf]  ;;  %v1075_v50 = vor.u32 %v1270_v42, %v1072_v43 }
  0x23   :  { %325 = vmatpush.bf16.msra.mxu1 %v1083_v33  ;;  %v1048_v51 = vld [vmem:[#allocation5 + $0x70] sm:$0xf0]  ;;  %v1054_v52 = vld [vmem:[#allocation5 + $0x68] sm:$0xf]  ;;  %v1268_v53 = vld [vmem:[#allocation5 + $0x74] sm:$0xf0]  ;;  %v1047_v56 = vor.u32 %v1267_v48, %v1046_v47 }
  0x24   :  { %339 = vmatpush.bf16.msra.mxu2 %v1087_v34  ;;  %353 = vmatpush.bf16.msra.mxu3 %v1091_v38  ;;  %v1266_v54 = vld [vmem:[#allocation5 + $0x6c] sm:$0xf]  ;;  %v1056_v55 = vld [vmem:[#allocation5 + $0x78] sm:$0xf0]  ;;  %v1051_v57 = vor.u32 %v1265_v49, %v1048_v51  ;;  %v1055_v58 = vor.u32 %v1268_v53, %v1054_v52  ;;  %v1030_v59 = vld [vmem:[#allocation5 + $0x40] sm:$0xf] }
  0x25   :  { %v1263_v60 = vld [vmem:[#allocation5 + $0x4c] sm:$0xf0]  ;;  %v1261_v61 = vld [vmem:[#allocation5 + $0x44] sm:$0xf]  ;;  %v1059_v62 = vor.u32 %v1266_v54, %v1056_v55  ;;  %v1032_v63 = vld [vmem:[#allocation5 + $0x50] sm:$0xf0] }
  0x26   :  { %312 = vmatpush.bf16.msra.mxu0 %v1063_v44  ;;  %v1038_v0 = vld [vmem:[#allocation5 + $0x48] sm:$0xf]  ;;  %v1264_v1 = vld [vmem:[#allocation5 + $0x54] sm:$0xf0]  ;;  %v1262_v2 = vld [vmem:[#allocation5 + $0x4c] sm:$0xf]  ;;  %v1031_v4 = vor.u32 %v1263_v60, %v1030_v59  ;;  %v1035_v5 = vor.u32 %v1261_v61, %v1032_v63 }
  0x27   :  { %326 = vmatpush.bf16.msra.mxu1 %v1067_v45  ;;  %v1040_v3 = vld [vmem:[#allocation5 + $0x58] sm:$0xf0]  ;;  %v1039_v6 = vor.u32 %v1264_v1, %v1038_v0  ;;  %v1014_v7 = vld [vmem:[#allocation5 + $0x20] sm:$0xf]  ;;  %v1259_v8 = vld [vmem:[#allocation5 + $0x2c] sm:$0xf0] }
  0x28   :  { %340 = vmatpush.bf16.msra.mxu2 %v1071_v46  ;;  %354 = vmatpush.bf16.msra.mxu3 %v1075_v50  ;;  %v1257_v9 = vld [vmem:[#allocation5 + $0x24] sm:$0xf]  ;;  %v1043_v10 = vor.u32 %v1262_v2, %v1040_v3  ;;  %v1016_v11 = vld [vmem:[#allocation5 + $0x30] sm:$0xf0]  ;;  %v1022_v12 = vld [vmem:[#allocation5 + $0x28] sm:$0xf]  ;;  %v1015_v17 = vor.u32 %v1259_v8, %v1014_v7 }
  0x29   :  { %v1260_v13 = vld [vmem:[#allocation5 + $0x34] sm:$0xf0]  ;;  %v1258_v14 = vld [vmem:[#allocation5 + $0x2c] sm:$0xf]  ;;  %v1024_v15 = vld [vmem:[#allocation5 + $0x38] sm:$0xf0]  ;;  %v1019_v21 = vor.u32 %v1257_v9, %v1016_v11 }
  0x2a   :  { %313 = vmatpush.bf16.msra.mxu0 %v1047_v56  ;;  %v998_v16 = vld [vmem:[#allocation5] sm:$0xf]  ;;  %v1255_v18 = vld [vmem:[#allocation5 + $0xc] sm:$0xf0]  ;;  %v1253_v19 = vld [vmem:[#allocation5 + $0x4] sm:$0xf]  ;;  %v1023_v22 = vor.u32 %v1260_v13, %v1022_v12  ;;  %v1027_v24 = vor.u32 %v1258_v14, %v1024_v15 }
  0x2b   :  { %327 = vmatpush.bf16.msra.mxu1 %v1051_v57  ;;  %v1000_v20 = vld [vmem:[#allocation5 + $0x10] sm:$0xf0]  ;;  %v1006_v23 = vld [vmem:[#allocation5 + $0x8] sm:$0xf]  ;;  %v1256_v25 = vld [vmem:[#allocation5 + $0x14] sm:$0xf0]  ;;  %v999_v28 = vor.u32 %v1255_v18, %v998_v16 }
  0x2c   :  { %341 = vmatpush.bf16.msra.mxu2 %v1055_v58  ;;  %355 = vmatpush.bf16.msra.mxu3 %v1059_v62  ;;  %v1254_v26 = vld [vmem:[#allocation5 + $0xc] sm:$0xf]  ;;  %v1008_v27 = vld [vmem:[#allocation5 + $0x18] sm:$0xf0]  ;;  %v1003_v29 = vor.u32 %v1253_v19, %v1000_v20  ;;  %v1007_v30 = vor.u32 %v1256_v25, %v1006_v23  ;;  %v1291_v36 = vld [vmem:[#allocation8 + $0x30] sm:$0xff]  ;;  %vm520_vm0 = vcmask 1041409  }
  0x2d   :  { %v1011_v31 = vor.u32 %v1254_v26, %v1008_v27  ;;  %v1292_v32 = vld [vmem:[#allocation8 + $0x38] sm:$0xff]  ;;  %v1299_v38 = vld [vmem:[#allocation8 + $0x70] sm:$0xff]  ;;  %v1290_v39 = vld [vmem:[#allocation8 + $0x28] sm:$0xff]  ;;  %vm522_vm1 = vcmask 1043459   ;;  %vm524_vm2 = vcmask 1045509   ;;  %vm526_vm3 = vcmask 1047559  }
  0x2e   :  { %314 = vmatpush.bf16.msra.mxu0 %v1031_v4  ;;  %v1252_v33 = vld [vmem:[#allocation2] sm:$0xff]  ;;  %v1298_v40 = vld [vmem:[#allocation8 + $0x68] sm:$0xff]  ;;  %v1289_v43 = vld [vmem:[#allocation8 + $0x20] sm:$0xff]  ;;  %s1542_s2 = smov [#allocation11]   ;;  %s980_s22 = sshll.u32 %s1637_s5, 4  ;;  %s981_s22 = int_to_ptr.hbm [resolvable:$true] %s980_s22 }
  0x2f   :  { %328 = vmatpush.bf16.msra.mxu1 %v1035_v5  ;;  %v1300_v34 = vld [vmem:[#allocation8 + $0x78] sm:$0xff]  ;;  %v1307_v41 = vld [vmem:[#allocation8 + $0xb0] sm:$0xff]  ;;  %v1297_v44 = vld [vmem:[#allocation8 + $0x60] sm:$0xff]  ;;  %s978_s4 = sshll.u32 %s1542_s2, 4  ;;  %s979_s4 = int_to_ptr.vmem [resolvable:$true] %s978_s4 }
  0x30   :  { %342 = vmatpush.bf16.msra.mxu2 %v1039_v6  ;;  %356 = vmatpush.bf16.msra.mxu3 %v1043_v10  ;;  %v1308_v35 = vld [vmem:[#allocation8 + $0xb8] sm:$0xff]  ;;  %v1315_v42 = vld [vmem:[#allocation8 + $0xf0] sm:$0xff]  ;;  %v1306_v45 = vld [vmem:[#allocation8 + $0xa8] sm:$0xff] }
  0x31   :  { %v1316_v37 = vld [vmem:[#allocation8 + $0xf8] sm:$0xff]  ;;  %v1314_v46 = vld [vmem:[#allocation8 + $0xe8] sm:$0xff]  ;;  %v1305_v49 = vld [vmem:[#allocation8 + $0xa0] sm:$0xff] }
  0x32   :  { %315 = vmatpush.bf16.msra.mxu0 %v1015_v17  ;;  %v1288_v47 = vld [vmem:[#allocation8 + $0x18] sm:$0xff]  ;;  %v1313_v50 = vld [vmem:[#allocation8 + $0xe0] sm:$0xff]  ;;  %v1287_v51 = vld [vmem:[#allocation8 + $0x10] sm:$0xff] }
  0x33   :  { %329 = vmatpush.bf16.msra.mxu1 %v1019_v21  ;;  %v1296_v48 = vld [vmem:[#allocation8 + $0x58] sm:$0xff]  ;;  %v1295_v52 = vld [vmem:[#allocation8 + $0x50] sm:$0xff]  ;;  %v1286_v55 = vld [vmem:[#allocation8 + $0x8] sm:$0xff] }
  0x34   :  { %343 = vmatpush.bf16.msra.mxu2 %v1023_v22  ;;  %357 = vmatpush.bf16.msra.mxu3 %v1027_v24  ;;  %v1304_v53 = vld [vmem:[#allocation8 + $0x98] sm:$0xff]  ;;  %v1294_v56 = vld [vmem:[#allocation8 + $0x48] sm:$0xff]  ;;  %v1303_v57 = vld [vmem:[#allocation8 + $0x90] sm:$0xff] }
  0x35   :  { %v1312_v54 = vld [vmem:[#allocation8 + $0xd8] sm:$0xff]  ;;  %v1311_v58 = vld [vmem:[#allocation8 + $0xd0] sm:$0xff]  ;;  %v1285_v59 = vld [vmem:[#allocation8] sm:$0xff] }
  0x36   :  { %316 = vmatpush.bf16.msra.mxu0 %v999_v28  ;;  %v1293_v60 = vld [vmem:[#allocation8 + $0x40] sm:$0xff]  ;;  %v1302_v61 = vld [vmem:[#allocation8 + $0x88] sm:$0xff]  ;;  %v133_v1 = vld [vmem:[#allocation7] sm:$0xf] }
  0x37   :  { %330 = vmatpush.bf16.msra.mxu1 %v1003_v29  ;;  %v1310_v62 = vld [vmem:[#allocation8 + $0xc8] sm:$0xff]  ;;  %v1301_v63 = vld [vmem:[#allocation8 + $0x80] sm:$0xff]  ;;  %v135_v2 = vperm.slane %v133_v1, 0  ;;  %v136_v3 = vperm.slane %v133_v1, 1  ;;  %v137_v8 = vperm.slane %v133_v1, 2  ;;  %v138_v10 = vperm.slane %v133_v1, 3 }
  0x38   :  { %344 = vmatpush.bf16.msra.mxu2 %v1007_v30  ;;  %358 = vmatpush.bf16.msra.mxu3 %v1011_v31  ;;  %v1309_v0 = vld [vmem:[#allocation8 + $0xc0] sm:$0xff] }
  0x39   :  { %317 = vmatmul.bf16.vlgmr.msra.gmra.mxu0 %v1252_v33  ;;  %v1331_v1 = vld [vmem:[#allocation10 + $0x3] ss:$0 sm:$0xff] }
  0x3a   :  { %451 = vmatpush.bf16.msrb.mxu0 %v1292_v32  ;;  %331 = vmatmul.bf16.vlgmr.msra.gmra.mxu1 %v1252_v33 }
  0x3b   :  { %604 = vmatpush.bf16.msrb.mxu1 %v1300_v34  ;;  %345 = vmatmul.bf16.vlgmr.msra.gmra.mxu2 %v1252_v33 }
  0x3c   :  { %359 = vmatmul.bf16.vlgmr.msra.gmra.mxu3 %v1252_v33  ;;  %753 = vmatpush.bf16.msrb.mxu2 %v1308_v35 }
  0x3d   :  { %900 = vmatpush.bf16.msrb.mxu3 %v1316_v37 }
  0x3e   :  { %452 = vmatpush.bf16.msrb.mxu0 %v1291_v36 }
  0x3f   :  { %605 = vmatpush.bf16.msrb.mxu1 %v1299_v38 }
  0x40   :  { %754 = vmatpush.bf16.msrb.mxu2 %v1307_v41 }
  0x41   :  { %901 = vmatpush.bf16.msrb.mxu3 %v1315_v42 }
  0x42   :  { %453 = vmatpush.bf16.msrb.mxu0 %v1290_v39 }
  0x43   :  { %606 = vmatpush.bf16.msrb.mxu1 %v1298_v40 }
  0x44   :  { %755 = vmatpush.bf16.msrb.mxu2 %v1306_v45 }
  0x45   :  { %902 = vmatpush.bf16.msrb.mxu3 %v1314_v46  ;;  %v1328_v46 = vld [vmem:[#allocation10] ss:$0 sm:$0xff] }
  0x46   :  { %454 = vmatpush.bf16.msrb.mxu0 %v1289_v43 }
  0x47   :  { %607 = vmatpush.bf16.msrb.mxu1 %v1297_v44 }
  0x48   :  { %756 = vmatpush.bf16.msrb.mxu2 %v1305_v49 }
  0x49   :  { %903 = vmatpush.bf16.msrb.mxu3 %v1313_v50 }
  0x4a   :  { %455 = vmatpush.bf16.msrb.mxu0 %v1288_v47  ;;  %v1329_v47 = vld [vmem:[#allocation10 + $0x1] ss:$0 sm:$0xff] }
  0x4b   :  { %608 = vmatpush.bf16.msrb.mxu1 %v1296_v48 }
  0x4c   :  { %757 = vmatpush.bf16.msrb.mxu2 %v1304_v53 }
  0x4d   :  { %904 = vmatpush.bf16.msrb.mxu3 %v1312_v54 }
  0x4e   :  { %456 = vmatpush.bf16.msrb.mxu0 %v1287_v51 }
  0x4f   :  { %609 = vmatpush.bf16.msrb.mxu1 %v1295_v52 }
  0x50   :  { %758 = vmatpush.bf16.msrb.mxu2 %v1303_v57 }
  0x51   :  { %905 = vmatpush.bf16.msrb.mxu3 %v1311_v58 }
  0x52   :  { %457 = vmatpush.bf16.msrb.mxu0 %v1286_v55 }
  0x53   :  { %610 = vmatpush.bf16.msrb.mxu1 %v1294_v56 }
  0x54   :  { %759 = vmatpush.bf16.msrb.mxu2 %v1302_v61 }
  0x55   :  { %906 = vmatpush.bf16.msrb.mxu3 %v1310_v62 }
  0x56   :  { %458 = vmatpush.bf16.msrb.mxu0 %v1285_v59 }
  0x57   :  { %611 = vmatpush.bf16.msrb.mxu1 %v1293_v60 }
  0x58   :  { %760 = vmatpush.bf16.msrb.mxu2 %v1301_v63 }
  0x59   :  { %907 = vmatpush.bf16.msrb.mxu3 %v1309_v0  ;;  %v1330_v0 = vld [vmem:[#allocation10 + $0x2] ss:$0 sm:$0xff] }
  0xb6   :  { %v318_v4 = vpop.f32.mrf.mxu0 }
  0xb7   :  { %v332_v5 = vpop.f32.mrf.mxu1  ;;  %v319_v6 = vadd.f32 %v318_v4, %v135_v2 }
  0xb8   :  { %v333_v7 = vadd.f32 %v332_v5, %v136_v3 }
  0xb9   :  { %1332 = vtanh.f32 %v319_v6 }
  0xba   :  { %1334 = vtanh.f32 %v333_v7 }
  0xbe   :  { %v346_v9 = vpop.f32.mrf.mxu2  ;;  %v320_v12 = vpop.f32.mrf.mxu0 }
  0xbf   :  { %v360_v11 = vpop.f32.mrf.mxu3  ;;  %v321_v13 = vadd.f32 %v320_v12, %v135_v2  ;;  %v334_v14 = vpop.f32.mrf.mxu1  ;;  %v347_v15 = vadd.f32 %v346_v9, %v137_v8 }
  0xc0   :  { %v335_v16 = vadd.f32 %v334_v14, %v136_v3  ;;  %v361_v17 = vadd.f32 %v360_v11, %v138_v10  ;;  %v1333_v18 = vpop.eup %1332 }
  0xc1   :  { %1336 = vtanh.f32 %v321_v13  ;;  %v1335_v19 = vpop.eup %1334 }
  0xc2   :  { %1338 = vtanh.f32 %v335_v16  ;;  %v373_v23 = vpack.c.bf16 %v1335_v19, %v1333_v18 }
  0xc3   :  { %1340 = vtanh.f32 %v347_v15 }
  0xc4   :  { %1342 = vtanh.f32 %v361_v17  ;;  %v399_v29 = vunpack.c.l.b16 %v373_v23  ;;  %v552_v30 = vunpack.c.h.b16 %v373_v23 }
  0xc6   :  { %v348_v20 = vpop.f32.mrf.mxu2 }
  0xc7   :  { %v349_v21 = vadd.f32 %v348_v20, %v137_v8  ;;  %v362_v22 = vpop.f32.mrf.mxu3  ;;  %v1337_v25 = vpop.eup %1336 }
  0xc8   :  { %v363_v24 = vadd.f32 %v362_v22, %v138_v10  ;;  %v1339_v26 = vpop.eup %1338 }
  0xc9   :  { %1344 = vtanh.f32 %v349_v21  ;;  %v1341_v27 = vpop.eup %1340  ;;  %v375_v28 = vpack.c.bf16 %v1339_v26, %v1337_v25  ;;  %v97_v26 = vld [vmem:[#allocation2] sm:$0xff]  }
  0xca   :  { %1346 = vtanh.f32 %v363_v24  ;;  %v1343_v31 = vpop.eup %1342 }
  0xcb   :  { %v400_v32 = vunpack.c.l.b16 %v375_v28  ;;  %v553_v33 = vunpack.c.h.b16 %v375_v28  ;;  %v374_v37 = vpack.c.bf16 %v1343_v31, %v1341_v27 }
  0xcd   :  { %v401_v35 = vpack.c.b16 %v400_v32, %v399_v29  ;;  %v554_v36 = vpack.c.b16 %v553_v33, %v552_v30  ;;  %v701_v40 = vunpack.c.l.b16 %v374_v37  ;;  %v848_v42 = vunpack.c.h.b16 %v374_v37 }
  0xcf   :  { %v1345_v34 = vpop.eup %1344  ;;  %459 = vmatmul.bf16.vlgmr.msrb.gmra.mxu0 %v401_v35  ;;  %612 = vmatmul.bf16.vlgmr.msrb.gmra.mxu1 %v554_v36  ;;  %v1593_v36 = vunpack.c.l.bf16 %v97_v26 }
  0xd0   :  { %v1347_v38 = vpop.eup %1346 }
  0xd1   :  { %v376_v39 = vpack.c.bf16 %v1347_v38, %v1345_v34 }
  0xd3   :  { %v702_v41 = vunpack.c.l.b16 %v376_v39  ;;  %v849_v43 = vunpack.c.h.b16 %v376_v39 }
  0xd5   :  { %v703_v44 = vpack.c.b16 %v702_v41, %v701_v40  ;;  %v850_v45 = vpack.c.b16 %v849_v43, %v848_v42 }
  0xd7   :  { %761 = vmatmul.bf16.vlgmr.msrb.gmra.mxu2 %v703_v44  ;;  %908 = vmatmul.bf16.vlgmr.msrb.gmra.mxu3 %v850_v45 }
 0x14c   :  { %v460_v48 = vpop.f32.mrf.mxu0  ;;  %v613_v49 = vpop.f32.mrf.mxu1 }
 0x14d   :  { %v461_v50 = vadd.f32 %v1328_v46, %v460_v48  ;;  %v614_v51 = vadd.f32 %v1329_v47, %v613_v49 }
 0x14f   :  { %v465_v52 = vrot.slane %v461_v50, 4  ;;  %v618_v53 = vrot.slane %v614_v51, 4 }
 0x151   :  { %v466_v54 = vmax.f32 %v461_v50, %v465_v52  ;;  %v619_v55 = vmax.f32 %v614_v51, %v618_v53 }
 0x153   :  { %v467_v56 = vrot.slane %v466_v54, 2  ;;  %v620_v57 = vrot.slane %v619_v55, 2 }
 0x154   :  { %v462_v58 = vpop.f32.mrf.mxu0  ;;  %v615_v59 = vpop.f32.mrf.mxu1 }
 0x155   :  { %v468_v60 = vmax.f32 %v466_v54, %v467_v56  ;;  %v621_v61 = vmax.f32 %v619_v55, %v620_v57  ;;  %v463_v62 = vadd.f32 %v1328_v46, %v462_v58  ;;  %v616_v63 = vadd.f32 %v1329_v47, %v615_v59 }
 0x157   :  { %v469_v2 = vrot.slane %v468_v60, 1  ;;  %v622_v3 = vrot.slane %v621_v61, 1  ;;  %v471_v4 = vrot.slane %v463_v62, 4  ;;  %v624_v5 = vrot.slane %v616_v63, 4 }
 0x159   :  { %v470_v8 = vmax.f32 %v468_v60, %v469_v2  ;;  %v623_v9 = vmax.f32 %v621_v61, %v622_v3  ;;  %v472_v10 = vmax.f32 %v463_v62, %v471_v4  ;;  %v625_v11 = vmax.f32 %v616_v63, %v624_v5 }
 0x15a   :  { %v762_v6 = vpop.f32.mrf.mxu2  ;;  %v909_v7 = vpop.f32.mrf.mxu3 }
 0x15b   :  { %v763_v12 = vadd.f32 %v1330_v0, %v762_v6  ;;  %v910_v13 = vadd.f32 %v1331_v1, %v909_v7  ;;  %v477_v14 = vsub.f32 %v461_v50, %v470_v8  ;;  %v630_v15 = vsub.f32 %v614_v51, %v623_v9 }
 0x15c   :  { %v473_v16 = vrot.slane %v472_v10, 2  ;;  %v626_v17 = vrot.slane %v625_v11, 2 }
 0x15d   :  { %v767_v18 = vrot.slane %v763_v12, 4  ;;  %v914_v19 = vrot.slane %v910_v13, 4  ;;  %v479_v20 = vmul.f32 1.442695, %v477_v14  ;;  %v632_v21 = vmul.f32 1.442695, %v630_v15 }
 0x15e   :  { %v474_v22 = vmax.f32 %v472_v10, %v473_v16  ;;  %v627_v23 = vmax.f32 %v625_v11, %v626_v17 }
 0x15f   :  { %v768_v24 = vmax.f32 %v763_v12, %v767_v18  ;;  %v915_v25 = vmax.f32 %v910_v13, %v914_v19  ;;  %1348 = vpow2.f32 %v479_v20 }
 0x160   :  { %v475_v27 = vrot.slane %v474_v22, 1  ;;  %v628_v28 = vrot.slane %v627_v23, 1  ;;  %1350 = vpow2.f32 %v632_v21 }
 0x161   :  { %v769_v29 = vrot.slane %v768_v24, 2  ;;  %v916_v30 = vrot.slane %v915_v25, 2 }
 0x162   :  { %v764_v31 = vpop.f32.mrf.mxu2  ;;  %v911_v32 = vpop.f32.mrf.mxu3  ;;  %v476_v33 = vmax.f32 %v474_v22, %v475_v27  ;;  %v629_v34 = vmax.f32 %v627_v23, %v628_v28 }
 0x163   :  { %v1591_v35 = vadd.f32 %v1330_v0, %v764_v31  ;;  %v770_v37 = vmax.f32 %v768_v24, %v769_v29  ;;  %v917_v38 = vmax.f32 %v915_v25, %v916_v30  ;;  %v1596_v42 = vadd.f32 %v1331_v1, %v911_v32 }
 0x164   :  { %v478_v39 = vsub.f32 %v463_v62, %v476_v33  ;;  %v631_v40 = vsub.f32 %v616_v63, %v629_v34  ;;  %v1602_v0 = vunpack.c.h.bf16 %v97_v26 }
 0x165   :  { %v773_v41 = vrot.slane %v1591_v35, 4  ;;  %v771_v43 = vrot.slane %v770_v37, 1  ;;  %v918_v44 = vrot.slane %v917_v38, 1  ;;  %v1349_v45 = vpop.eup %1348  ;;  %v920_v56 = vrot.slane %v1596_v42, 4 }
 0x166   :  { %v481_v46 = vmul.f32 1.442695, %v478_v39  ;;  %v634_v47 = vmul.f32 1.442695, %v631_v40  ;;  %v1351_v49 = vpop.eup %1350  ;;  %v483_v50 = vmul.f32 %v1349_v45, %v1593_v36  ;;  %v497_v51 = vrot.slane %v1349_v45, 4 }
 0x167   :  { %v774_v48 = vmax.f32 %v1591_v35, %v773_v41  ;;  %v772_v52 = vmax.f32 %v770_v37, %v771_v43  ;;  %v919_v53 = vmax.f32 %v917_v38, %v918_v44  ;;  %v650_v54 = vrot.slane %v1351_v49, 4 }
 0x168   :  { %1352 = vpow2.f32 %v481_v46  ;;  %v498_v57 = vadd.f32 %v1349_v45, %v497_v51  ;;  %v636_v58 = vmul.f32 %v1351_v49, %v1593_v36  ;;  %v485_v62 = vrot.slane %v483_v50, 4 }
 0x169   :  { %v775_v55 = vrot.slane %v774_v48, 2  ;;  %1354 = vpow2.f32 %v634_v47  ;;  %v779_v59 = vsub.f32 %v763_v12, %v772_v52  ;;  %v926_v60 = vsub.f32 %v910_v13, %v919_v53 }
 0x16a   :  { %v499_v63 = vrot.slane %v498_v57, 2  ;;  %v651_v2 = vadd.f32 %v1351_v49, %v650_v54  ;;  %v921_v5 = vmax.f32 %v1596_v42, %v920_v56  ;;  %v638_v6 = vrot.slane %v636_v58, 4 }
 0x16b   :  { %v776_v61 = vmax.f32 %v774_v48, %v775_v55  ;;  %v781_v1 = vmul.f32 1.442695, %v779_v59  ;;  %v928_v3 = vmul.f32 1.442695, %v926_v60  ;;  %v486_v10 = vadd.f32 %v485_v62, %v483_v50 }
 0x16c   :  { %v500_v8 = vadd.f32 %v499_v63, %v498_v57  ;;  %v652_v14 = vrot.slane %v651_v2, 2  ;;  %v922_v16 = vrot.slane %v921_v5, 2  ;;  %v639_v17 = vadd.f32 %v638_v6, %v636_v58 }
 0x16d   :  { %v777_v4 = vrot.slane %v776_v61, 1  ;;  %1356 = vpow2.f32 %v781_v1  ;;  %v487_v24 = vrot.slane %v486_v10, 2 }
 0x16e   :  { %v1353_v7 = vpop.eup %1352  ;;  %1358 = vpow2.f32 %v928_v3  ;;  %v501_v20 = vrot.slane %v500_v8, 1  ;;  %v653_v28 = vadd.f32 %v652_v14, %v651_v2  ;;  %v923_v31 = vmax.f32 %v921_v5, %v922_v16 }
 0x16f   :  { %v1355_v9 = vpop.eup %1354  ;;  %v484_v11 = vmul.f32 %v1353_v7, %v1602_v0  ;;  %v503_v12 = vrot.slane %v1353_v7, 4  ;;  %v778_v13 = vmax.f32 %v776_v61, %v777_v4  ;;  %v640_v32 = vrot.slane %v639_v17, 2 }
 0x170   :  { %v656_v15 = vrot.slane %v1355_v9, 4  ;;  %v637_v21 = vmul.f32 %v1355_v9, %v1602_v0  ;;  %v502_v38 = vadd.f32 %v501_v20, %v500_v8  ;;  %v488_v47 = vadd.f32 %v487_v24, %v486_v10 }
 0x171   :  { %v491_v18 = vrot.slane %v484_v11, 4  ;;  %v504_v19 = vadd.f32 %v1353_v7, %v503_v12  ;;  %v780_v26 = vsub.f32 %v1591_v35, %v778_v13  ;;  %v654_v35 = vrot.slane %v653_v28, 1 }
 0x172   :  { %v657_v22 = vadd.f32 %v1355_v9, %v656_v15  ;;  %v644_v39 = vrot.slane %v637_v21, 4  ;;  %v924_v49 = vrot.slane %v923_v31, 1  ;;  %v641_v60 = vadd.f32 %v640_v32, %v639_v17 }
 0x173   :  { %v1357_v23 = vpop.eup %1356  ;;  %v505_v25 = vrot.slane %v504_v19, 2  ;;  %v492_v33 = vadd.f32 %v491_v18, %v484_v11  ;;  %v783_v46 = vmul.f32 1.442695, %v780_v26  ;;  %v655_v61 = vadd.f32 %v654_v35, %v653_v28 }
 0x174   :  { %v1359_v27 = vpop.eup %1358  ;;  %v658_v29 = vrot.slane %v657_v22, 2  ;;  %v785_v30 = vmul.f32 %v1357_v23, %v1593_v36  ;;  %v799_v37 = vrot.slane %v1357_v23, 4  ;;  %v645_v53 = vadd.f32 %v644_v39, %v637_v21 }
 0x175   :  { %v506_v34 = vadd.f32 %v505_v25, %v504_v19  ;;  %v946_v45 = vrot.slane %v1359_v27, 4  ;;  %v493_v50 = vrot.slane %v492_v33, 2  ;;  %1360 = vpow2.f32 %v783_v46 }
 0x176   :  { %v659_v40 = vadd.f32 %v658_v29, %v657_v22  ;;  %v787_v41 = vrot.slane %v785_v30, 4  ;;  %v800_v44 = vadd.f32 %v1357_v23, %v799_v37  ;;  %1362 = vrcp.f32 %v502_v38 }
 0x177   :  { %v507_v43 = vrot.slane %v506_v34, 1  ;;  %v932_v54 = vmul.f32 %v1359_v27, %v1593_v36  ;;  %v925_v55 = vmax.f32 %v923_v31, %v924_v49  ;;  %v947_v58 = vadd.f32 %v1359_v27, %v946_v45 }
 0x178   :  { %v660_v48 = vrot.slane %v659_v40, 1  ;;  %v801_v52 = vrot.slane %v800_v44, 2  ;;  %v788_v57 = vadd.f32 %v787_v41, %v785_v30  ;;  %v494_v63 = vadd.f32 %v493_v50, %v492_v33 }
 0x179   :  { %v508_v51 = vadd.f32 %v507_v43, %v506_v34  ;;  %v927_v59 = vsub.f32 %v1596_v42, %v925_v55  ;;  %v489_v1 = vrot.slane %v488_v47, 1  ;;  %v646_v2 = vrot.slane %v645_v53, 2 }
 0x17a   :  { %v661_v56 = vadd.f32 %v660_v48, %v659_v40  ;;  %v802_v62 = vadd.f32 %v801_v52, %v800_v44  ;;  %v934_v3 = vrot.slane %v932_v54, 4  ;;  %v789_v6 = vrot.slane %v788_v57, 2 }
 0x17b   :  { %1364 = vrcp.f32 %v508_v51  ;;  %v930_v4 = vmul.f32 1.442695, %v927_v59  ;;  %v1361_v5 = vpop.eup %1360  ;;  %v948_v7 = vrot.slane %v947_v58, 2  ;;  %v495_v36 = vrot.slane %v494_v63, 1 }
 0x17c   :  { %1366 = vrcp.f32 %v661_v56  ;;  %v1363_v8 = vpop.eup %1362  ;;  %v786_v9 = vmul.f32 %v1361_v5, %v1602_v0  ;;  %v805_v10 = vrot.slane %v1361_v5, 4  ;;  %v642_v42 = vrot.slane %v641_v60, 1 }
 0x17d   :  { %1368 = vpow2.f32 %v930_v4  ;;  %v803_v12 = vrot.slane %v802_v62, 1  ;;  %v496_v13 = vadd.f32 %v495_v36, %v494_v63  ;;  %v935_v14 = vadd.f32 %v934_v3, %v932_v54 }
 0x17e   :  { %1370 = vrcp.f32 %v655_v61  ;;  %v793_v15 = vrot.slane %v786_v9, 4  ;;  %v806_v16 = vadd.f32 %v1361_v5, %v805_v10  ;;  %v490_v17 = vadd.f32 %v489_v1, %v488_v47 }
 0x17f   :  { %v790_v18 = vadd.f32 %v789_v6, %v788_v57  ;;  %v949_v19 = vadd.f32 %v948_v7, %v947_v58  ;;  %v647_v21 = vadd.f32 %v646_v2, %v645_v53  ;;  %v804_v26 = vadd.f32 %v803_v12, %v802_v62 }
 0x180   :  { %v794_v22 = vadd.f32 %v793_v15, %v786_v9  ;;  %v807_v23 = vrot.slane %v806_v16, 2  ;;  %v511_v24 = vmul.f32 %v1363_v8, %v490_v17  ;;  %v643_v41 = vadd.f32 %v642_v42, %v641_v60 }
 0x181   :  { %v1365_v11 = vpop.eup %1364  ;;  %v648_v28 = vrot.slane %v647_v21, 1  ;;  %1372 = vrcp.f32 %v804_v26  ;;  %v950_v35 = vrot.slane %v949_v19, 1  ;;  %v936_v57 = vrot.slane %v935_v14, 2 }
 0x182   :  { %v512_v20 = vmul.f32 %v1365_v11, %v496_v13  ;;  %v1367_v25 = vpop.eup %1366  ;;  %v795_v30 = vrot.slane %v794_v22, 2  ;;  %v808_v31 = vadd.f32 %v807_v23, %v806_v16  ;;  %v791_v60 = vrot.slane %v790_v18, 1 }
 0x183   :  { %v1369_v29 = vpop.eup %1368  ;;  %v649_v38 = vadd.f32 %v648_v28, %v647_v21  ;;  %v951_v58 = vadd.f32 %v950_v35, %v949_v19  ;;  %v937_v6 = vadd.f32 %v936_v57, %v935_v14 }
 0x184   :  { %v519_v27 = vrot.slane %v512_v20, 7  ;;  %v1371_v32 = vpop.eup %1370  ;;  %v933_v33 = vmul.f32 %v1369_v29, %v1602_v0  ;;  %v952_v34 = vrot.slane %v1369_v29, 4  ;;  %v809_v39 = vrot.slane %v808_v31, 1 }
 0x185   :  { %v796_v43 = vadd.f32 %v795_v30, %v794_v22  ;;  %v665_v47 = vmul.f32 %v1367_v25, %v649_v38  ;;  %v664_v51 = vmul.f32 %v1371_v32, %v643_v41  ;;  %v792_v7 = vadd.f32 %v791_v60, %v790_v18 }
 0x186   :  { %v521_v37 = vsel %vm520_vm0, %v519_v27, %v511_v24  ;;  %v940_v44 = vrot.slane %v933_v33, 4  ;;  %v953_v45 = vadd.f32 %v1369_v29, %v952_v34  ;;  %v810_v48 = vadd.f32 %v809_v39, %v808_v31 }
 0x187   :  { %v523_v40 = vsel %vm522_vm1, %v519_v27, %v521_v37  ;;  %v670_v52 = vrot.slane %v665_v47, 7  ;;  %v797_v56 = vrot.slane %v796_v43, 1  ;;  %v1373_v63 = vpop.eup %1372  ;;  %v938_v11 = vrot.slane %v937_v6, 1 }
 0x188   :  { %v525_v46 = vsel %vm524_vm2, %v519_v27, %v523_v40  ;;  %v941_v0 = vadd.f32 %v940_v44, %v933_v33  ;;  %v954_v50 = vrot.slane %v953_v45, 2  ;;  %1374 = vrcp.f32 %v810_v48 }
 0x189   :  { %v527_v49 = vsel %vm526_vm3, %v519_v27, %v525_v46  ;;  %v671_v55 = vsel %vm520_vm0, %v670_v52, %v664_v51  ;;  %v798_v4 = vadd.f32 %v797_v56, %v796_v43  ;;  %1376 = vrcp.f32 %v951_v58 }
 0x18a   :  { %529 = vst [vmem:[#allocation11] sm:$0x3] %v527_v49  ;;  %v942_v53 = vrot.slane %v941_v0, 2  ;;  %v955_v54 = vadd.f32 %v954_v50, %v953_v45  ;;  %v672_v59 = vsel %vm522_vm1, %v670_v52, %v671_v55  ;;  %v813_v9 = vmul.f32 %v1373_v63, %v792_v7 }
 0x18b   :  { %v673_v62 = vsel %vm524_vm2, %v670_v52, %v672_v59  ;;  %v939_v14 = vadd.f32 %v938_v11, %v937_v6 }
 0x18c   :  { %v956_v61 = vrot.slane %v955_v54, 1  ;;  %v674_v1 = vsel %vm526_vm3, %v670_v52, %v673_v62  ;;  %v943_v2 = vadd.f32 %v942_v53, %v941_v0 }
 0x18d   :  { %676 = vst [vmem:[#allocation11 + $0x2] sm:$0x3] %v674_v1 }
 0x18e   :  { %v957_v3 = vadd.f32 %v956_v61, %v955_v54  ;;  %v1375_v5 = vpop.eup %1374  ;;  %v944_v8 = vrot.slane %v943_v2, 1 }
 0x18f   :  { %v814_v36 = vmul.f32 %v1375_v5, %v798_v4  ;;  %v1377_v12 = vpop.eup %1376 }
 0x190   :  { %1378 = vrcp.f32 %v957_v3  ;;  %v945_v15 = vadd.f32 %v944_v8, %v943_v2  ;;  %v960_v18 = vmul.f32 %v1377_v12, %v939_v14 }
 0x191   :  { %v819_v10 = vrot.slane %v814_v36, 7 }
 0x193   :  { %v820_v42 = vsel %vm520_vm0, %v819_v10, %v813_v9 }
 0x194   :  { %v821_v13 = vsel %vm522_vm1, %v819_v10, %v820_v42 }
 0x195   :  { %v822_v17 = vsel %vm524_vm2, %v819_v10, %v821_v13 }
 0x196   :  { %v1379_v16 = vpop.eup %1378  ;;  %v823_v19 = vsel %vm526_vm3, %v819_v10, %v822_v17 }
 0x197   :  { %v961_v20 = vmul.f32 %v1379_v16, %v945_v15  ;;  %825 = vst [vmem:[#allocation11 + $0x4] sm:$0x3] %v823_v19 }
 0x199   :  { %v966_v21 = vrot.slane %v961_v20, 7 }
 0x19b   :  { %v967_v22 = vsel %vm520_vm0, %v966_v21, %v960_v18 }
 0x19c   :  { %v968_v23 = vsel %vm522_vm1, %v966_v21, %v967_v22 }
 0x19d   :  { %v969_v24 = vsel %vm524_vm2, %v966_v21, %v968_v23 }
 0x19e   :  { %v970_v25 = vsel %vm526_vm3, %v966_v21, %v969_v24 }
 0x19f   :  { %972 = vst [vmem:[#allocation11 + $0x6] sm:$0x3] %v970_v25 }
 0x1a0   :  { %983 = dma.vmem_to_hbm [thread:$0]  %s979_s4, 128, %s981_s22, [#allocation4]  }
 0x1a1   :  { %1530 = dma.done.wait [#allocation4], 128  }
 0x1a2   :  { %1531 = vsyncadd [#allocation4], 4294967168 }
 0x1a3   :  { %988 = vsyncpa [#allocation3], 1 }
 0x1a4   :  { %989 = vsyncpa [#allocation6], 1 }
 0x1a5   :  { %990 = vsyncpa [#allocation9], 1 }
 0x1a6   :  { %991 = vsyncpa [#allocation4], 1 }

</bundles_post_ra>
